<compile_context>
chip_gen: v6e
topology: v6e:2x2x1
jax: 0.10.0
libtpu: 0.0.40
codegen_flags: <defaults>
</compile_context>

<pallas_src>
import jax
import jax.numpy as jnp
from jax.experimental import pallas as pl
from jax.experimental.pallas import tpu as pltpu


def _mlp_kernel(xT_ref,
                w1_ref, b1_ref,
                w2_ref, b2_ref,
                w3_ref, b3_ref,
                w4_ref, b4_ref,
                w5_ref, b5_ref,
                oT_ref):
    # xT_ref: [D_in, TB] (batch on lanes). Weights: [out, in]. Biases: [out, 1].
    x = xT_ref[...].astype(jnp.float32)

    # Hoist bias reads once per body.
    b1 = b1_ref[...]
    b2 = b2_ref[...]
    b3 = b3_ref[...]
    b4 = b4_ref[...]
    b5 = b5_ref[...]

    # preprocessor: Linear -> Tanh -> Linear
    t = jnp.tanh(jnp.dot(w1_ref[...], x, preferred_element_type=jnp.float32) + b1)
    p = jnp.dot(w2_ref[...], t, preferred_element_type=jnp.float32) + b2

    # hidden: Linear(tanh(p))
    h = jnp.dot(w3_ref[...], jnp.tanh(p), preferred_element_type=jnp.float32) + b3

    # postprocessor: Linear -> Tanh -> Linear, applied to tanh(h)
    q = jnp.tanh(jnp.dot(w4_ref[...], jnp.tanh(h),
                         preferred_element_type=jnp.float32) + b4)
    out = jnp.dot(w5_ref[...], q, preferred_element_type=jnp.float32) + b5

    oT_ref[...] = out.astype(oT_ref.dtype)


def _batch_map(i):
    return (0, i)        # tile along the lane (batch) axis


def _const_map(i):
    return (0, 0)        # weights/biases: one block, VMEM-resident for all steps


def _round_up(n, m):
    return -(-n // m) * m


def _pick_lane_tile(batch, block_b):
    """Batch (lane) tile: a multiple of 128 unless it spans the whole batch."""
    block_b = int(block_b)
    if batch <= block_b:
        # Big-enough batches split into >=2 lane-aligned tiles so the
        # "parallel" axis can feed both v7x TensorCores.
        if batch >= 512:
            return _round_up(-(-batch // 2), 128)
        return batch                      # single full-extent block (any B)
    return max(128, (block_b // 128) * 128)


def classical_solver2_forward(x, params, *, block_b=32768):
    """x: [B, D_in] float32.

    params: dict with weights in PyTorch's [out, in] layout, biases as [out, 1].
    block_b: max batch elements (lane columns) per grid step.
    """
    if x.ndim != 2:
        raise ValueError(f"Expected 2D input tensor, got shape {x.shape}")
    batch, d_in = x.shape
    hid = params["w1"].shape[0]
    d_out = params["w5"].shape[0]

    tb = _pick_lane_tile(batch, block_b)
    steps = pl.cdiv(batch, tb)

    # Lane-dense layout: batch on the lane axis. These transposes of narrow
    # [B,4]/[B,2] arrays are one-time XLA relayouts outside the kernel.
    xT = x.T                              # [d_in, B]

    operands = (
        xT,
        params["w1"], params["b1"],
        params["w2"], params["b2"],
        params["w3"], params["b3"],
        params["w4"], params["b4"],
        params["w5"], params["b5"],
    )

    in_specs = [pl.BlockSpec((d_in, tb), _batch_map)]
    # NOTE: the 10 tiny weight/bias operands could be packed into 1-2 slabs to
    # save a few startup DMAs; minor next to the layout/tiling wins, skipped.
    in_specs += [pl.BlockSpec(op.shape, _const_map) for op in operands[1:]]

    # VMEM budget from (8,128)-padded f32 buffers: double-buffered x/out tiles
    # + ~6 live hid-wide intermediates, 2x headroom, capped at 48 MiB
    # (< v7x 64 MiB physical, << v5e/v6e 128 MiB).
    lane = _round_up(tb, 128)
    est = 4 * lane * (2 * _round_up(d_in, 8) + 2 * _round_up(d_out, 8)
                      + 6 * _round_up(hid, 8))
    vmem_limit = int(min(max(2 * est, 32 * 1024 * 1024), 48 * 1024 * 1024))

    outT = pl.pallas_call(
        _mlp_kernel,
        out_shape=jax.ShapeDtypeStruct((d_out, batch), jnp.float32),
        grid=(steps,),
        in_specs=in_specs,
        out_specs=pl.BlockSpec((d_out, tb), _batch_map),
        compiler_params=pltpu.CompilerParams(
            dimension_semantics=("parallel",),
            vmem_limit_bytes=vmem_limit),
    )(*operands)

    return outT.T                          # [B, d_out]


# ---------------------------------------------------------------------------
# Parameter init mirroring the PyTorch module (weights stored [out, in]).
# ---------------------------------------------------------------------------
def _xavier_normal(key, fan_out, fan_in):
    std = (2.0 / (fan_in + fan_out)) ** 0.5
    return std * jax.random.normal(key, (fan_out, fan_in), dtype=jnp.float32)


def _torch_default_linear(key, fan_out, fan_in):
    # PyTorch nn.Linear default: U(-1/sqrt(fan_in), 1/sqrt(fan_in))
    kw, kb = jax.random.split(key)
    bound = 1.0 / (fan_in ** 0.5)
    w = jax.random.uniform(kw, (fan_out, fan_in), jnp.float32, -bound, bound)
    b = jax.random.uniform(kb, (fan_out, 1), jnp.float32, -bound, bound)
    return w, b


def init_params(key, classic_network):
    d_in = classic_network[0]
    hid = classic_network[-2]
    d_out = classic_network[-1]
    keys = jax.random.split(key, 5)

    # preprocessor linears: xavier_normal_ weight, zero bias (_initialize_weights)
    w1 = _xavier_normal(keys[0], hid, d_in)
    b1 = jnp.zeros((hid, 1), jnp.float32)
    w2 = _xavier_normal(keys[1], hid, hid)
    b2 = jnp.zeros((hid, 1), jnp.float32)

    # hidden & postprocessor keep PyTorch's default init
    w3, b3 = _torch_default_linear(keys[2], hid, hid)
    w4, b4 = _torch_default_linear(keys[3], hid, hid)
    w5, b5 = _torch_default_linear(keys[4], d_out, hid)

    return {"w1": w1, "b1": b1, "w2": w2, "b2": b2, "w3": w3, "b3": b3,
            "w4": w4, "b4": b4, "w5": w5, "b5": b5}


def reference_forward(x, p):
    def lin(v, w, b):
        return v @ w.T + b[:, 0]
    t = jnp.tanh(lin(x, p["w1"], p["b1"]))
    pre = lin(t, p["w2"], p["b2"])
    h = lin(jnp.tanh(pre), p["w3"], p["b3"])
    q = jnp.tanh(lin(jnp.tanh(h), p["w4"], p["b4"]))
    return lin(q, p["w5"], p["b5"])


if __name__ == "__main__":
    # classic_network = [D_in, ..., hidden, D_out]
    classic_network = [4, 32, 32, 2]

    key = jax.random.PRNGKey(0)
    kx, kx2, kp = jax.random.split(key, 3)
    params = init_params(kp, classic_network)

    # Tolerance is loose-ish because MXU matmul passes (Mosaic) and XLA's dot
    # may differ slightly at default f32 precision; real bugs are O(0.1-1).
    ATOL = RTOL = 1e-2

    # Small case (B=8): single full-extent block, single grid step.
    x_small = jax.random.normal(kx, (8, classic_network[0]), dtype=jnp.float32)
    out_small = jax.block_until_ready(classical_solver2_forward(x_small, params))
    ref_small = reference_forward(x_small, params)
    assert out_small.shape == (8, classic_network[-1])
    assert jnp.allclose(out_small, ref_small, atol=ATOL, rtol=RTOL), \
        "small-batch mismatch vs JAX reference"

    # Larger, non-multiple batch with a small tile: exercises the multi-step
    # batch grid (3 lane tiles of 128), VMEM-resident weights, the 'parallel'
    # axis, and the masked ragged final tile (no jnp.pad copy of x).
    x_big = jax.random.normal(kx2, (300, classic_network[0]), dtype=jnp.float32)
    out_big = jax.block_until_ready(
        classical_solver2_forward(x_big, params, block_b=128))
    ref_big = reference_forward(x_big, params)
    assert out_big.shape == (300, classic_network[-1])
    assert jnp.allclose(out_big, ref_big, atol=ATOL, rtol=RTOL), \
        "tiled-batch (ragged last tile) mismatch vs JAX reference"

    print("KERNEL_OK")
</pallas_src>

<mosaic_0001>
module attributes {stable_mosaic.version = 11 : i64} {
  func.func @_mlp_kernel(%arg0: i32, %arg1: memref<4x8xf32, #tpu.memory_space<vmem>>, %arg2: memref<32x4xf32, #tpu.memory_space<vmem>>, %arg3: memref<32x1xf32, #tpu.memory_space<vmem>>, %arg4: memref<32x32xf32, #tpu.memory_space<vmem>>, %arg5: memref<32x1xf32, #tpu.memory_space<vmem>>, %arg6: memref<32x32xf32, #tpu.memory_space<vmem>>, %arg7: memref<32x1xf32, #tpu.memory_space<vmem>>, %arg8: memref<32x32xf32, #tpu.memory_space<vmem>>, %arg9: memref<32x1xf32, #tpu.memory_space<vmem>>, %arg10: memref<2x32xf32, #tpu.memory_space<vmem>>, %arg11: memref<2x1xf32, #tpu.memory_space<vmem>>, %arg12: memref<2x8xf32, #tpu.memory_space<vmem>>) attributes {dimension_semantics = [#tpu.dimension_semantics<parallel>], iteration_bounds = array<i64: 1>, scalar_prefetch = 0 : i64, scratch_operands = 0 : i64, tpu.core_type = #tpu.core_type<tc>, window_params = [{transform_indices = @transform_0, window_bounds = array<i64: 4, 8>}, {pipeline_mode = #tpu.pipeline_mode<synchronous>, transform_indices = @transform_1, window_bounds = array<i64: 32, 4>}, {pipeline_mode = #tpu.pipeline_mode<synchronous>, transform_indices = @transform_2, window_bounds = array<i64: 32, 1>}, {pipeline_mode = #tpu.pipeline_mode<synchronous>, transform_indices = @transform_3, window_bounds = array<i64: 32, 32>}, {pipeline_mode = #tpu.pipeline_mode<synchronous>, transform_indices = @transform_4, window_bounds = array<i64: 32, 1>}, {pipeline_mode = #tpu.pipeline_mode<synchronous>, transform_indices = @transform_5, window_bounds = array<i64: 32, 32>}, {pipeline_mode = #tpu.pipeline_mode<synchronous>, transform_indices = @transform_6, window_bounds = array<i64: 32, 1>}, {pipeline_mode = #tpu.pipeline_mode<synchronous>, transform_indices = @transform_7, window_bounds = array<i64: 32, 32>}, {pipeline_mode = #tpu.pipeline_mode<synchronous>, transform_indices = @transform_8, window_bounds = array<i64: 32, 1>}, {pipeline_mode = #tpu.pipeline_mode<synchronous>, transform_indices = @transform_9, window_bounds = array<i64: 2, 32>}, {pipeline_mode = #tpu.pipeline_mode<synchronous>, transform_indices = @transform_10, window_bounds = array<i64: 2, 1>}, {transform_indices = @transform_11, window_bounds = array<i64: 2, 8>}]} {
    %c0 = arith.constant 0 : index
    %c0_0 = arith.constant 0 : index
    %0 = vector.load %arg1[%c0, %c0_0] : memref<4x8xf32, #tpu.memory_space<vmem>>, vector<4x8xf32>
    %c0_1 = arith.constant 0 : index
    %c0_2 = arith.constant 0 : index
    %1 = vector.load %arg3[%c0_1, %c0_2] : memref<32x1xf32, #tpu.memory_space<vmem>>, vector<32x1xf32>
    %c0_3 = arith.constant 0 : index
    %c0_4 = arith.constant 0 : index
    %2 = vector.load %arg5[%c0_3, %c0_4] : memref<32x1xf32, #tpu.memory_space<vmem>>, vector<32x1xf32>
    %c0_5 = arith.constant 0 : index
    %c0_6 = arith.constant 0 : index
    %3 = vector.load %arg7[%c0_5, %c0_6] : memref<32x1xf32, #tpu.memory_space<vmem>>, vector<32x1xf32>
    %c0_7 = arith.constant 0 : index
    %c0_8 = arith.constant 0 : index
    %4 = vector.load %arg9[%c0_7, %c0_8] : memref<32x1xf32, #tpu.memory_space<vmem>>, vector<32x1xf32>
    %c0_9 = arith.constant 0 : index
    %c0_10 = arith.constant 0 : index
    %5 = vector.load %arg11[%c0_9, %c0_10] : memref<2x1xf32, #tpu.memory_space<vmem>>, vector<2x1xf32>
    %c0_11 = arith.constant 0 : index
    %c0_12 = arith.constant 0 : index
    %6 = vector.load %arg2[%c0_11, %c0_12] : memref<32x4xf32, #tpu.memory_space<vmem>>, vector<32x4xf32>
    %cst = arith.constant dense<0.000000e+00> : vector<32x8xf32>
    %7 = tpu.matmul %6, %0, %cst {dimension_numbers = #tpu.dot_dimension_numbers<[1], [0], [0], [1], [0, 0, 1, 1], [], []>} : vector<32x4xf32>, vector<4x8xf32>, vector<32x8xf32> -> vector<32x8xf32>
    %8 = vector.broadcast %1 : vector<32x1xf32> to vector<32x8xf32>
    %9 = arith.addf %7, %8 : vector<32x8xf32>
    %10 = math.tanh %9 : vector<32x8xf32>
    %c0_13 = arith.constant 0 : index
    %c0_14 = arith.constant 0 : index
    %11 = vector.load %arg4[%c0_13, %c0_14] : memref<32x32xf32, #tpu.memory_space<vmem>>, vector<32x32xf32>
    %cst_15 = arith.constant dense<0.000000e+00> : vector<32x8xf32>
    %12 = tpu.matmul %11, %10, %cst_15 {dimension_numbers = #tpu.dot_dimension_numbers<[1], [0], [0], [1], [0, 0, 1, 1], [], []>} : vector<32x32xf32>, vector<32x8xf32>, vector<32x8xf32> -> vector<32x8xf32>
    %13 = vector.broadcast %2 : vector<32x1xf32> to vector<32x8xf32>
    %14 = arith.addf %12, %13 : vector<32x8xf32>
    %c0_16 = arith.constant 0 : index
    %c0_17 = arith.constant 0 : index
    %15 = vector.load %arg6[%c0_16, %c0_17] : memref<32x32xf32, #tpu.memory_space<vmem>>, vector<32x32xf32>
    %16 = math.tanh %14 : vector<32x8xf32>
    %cst_18 = arith.constant dense<0.000000e+00> : vector<32x8xf32>
    %17 = tpu.matmul %15, %16, %cst_18 {dimension_numbers = #tpu.dot_dimension_numbers<[1], [0], [0], [1], [0, 0, 1, 1], [], []>} : vector<32x32xf32>, vector<32x8xf32>, vector<32x8xf32> -> vector<32x8xf32>
    %18 = vector.broadcast %3 : vector<32x1xf32> to vector<32x8xf32>
    %19 = arith.addf %17, %18 : vector<32x8xf32>
    %c0_19 = arith.constant 0 : index
    %c0_20 = arith.constant 0 : index
    %20 = vector.load %arg8[%c0_19, %c0_20] : memref<32x32xf32, #tpu.memory_space<vmem>>, vector<32x32xf32>
    %21 = math.tanh %19 : vector<32x8xf32>
    %cst_21 = arith.constant dense<0.000000e+00> : vector<32x8xf32>
    %22 = tpu.matmul %20, %21, %cst_21 {dimension_numbers = #tpu.dot_dimension_numbers<[1], [0], [0], [1], [0, 0, 1, 1], [], []>} : vector<32x32xf32>, vector<32x8xf32>, vector<32x8xf32> -> vector<32x8xf32>
    %23 = vector.broadcast %4 : vector<32x1xf32> to vector<32x8xf32>
    %24 = arith.addf %22, %23 : vector<32x8xf32>
    %25 = math.tanh %24 : vector<32x8xf32>
    %c0_22 = arith.constant 0 : index
    %c0_23 = arith.constant 0 : index
    %26 = vector.load %arg10[%c0_22, %c0_23] : memref<2x32xf32, #tpu.memory_space<vmem>>, vector<2x32xf32>
    %cst_24 = arith.constant dense<0.000000e+00> : vector<2x8xf32>
    %27 = tpu.matmul %26, %25, %cst_24 {dimension_numbers = #tpu.dot_dimension_numbers<[1], [0], [0], [1], [0, 0, 1, 1], [], []>} : vector<2x32xf32>, vector<32x8xf32>, vector<2x8xf32> -> vector<2x8xf32>
    %28 = vector.broadcast %5 : vector<2x1xf32> to vector<2x8xf32>
    %29 = arith.addf %27, %28 : vector<2x8xf32>
    %c0_25 = arith.constant 0 : index
    %c0_26 = arith.constant 0 : index
    %30 = vector.load %arg12[%c0_25, %c0_26] : memref<2x8xf32, #tpu.memory_space<vmem>>, vector<2x8xf32>
    tpu.vector_store %arg12[%c0_25, %c0_26], %29 {strides = array<i32>} : memref<2x8xf32, #tpu.memory_space<vmem>>, vector<2x8xf32>,
    return
  }
  func.func @transform_0(%arg0: i32) -> (i32, i32) {
    %c0_i32 = arith.constant 0 : i32
    %c0_i32_0 = arith.constant 0 : i32
    return %c0_i32, %arg0 : i32, i32
  }
  func.func @transform_1(%arg0: i32) -> (i32, i32) {
    %c0_i32 = arith.constant 0 : i32
    %c0_i32_0 = arith.constant 0 : i32
    %c0_i32_1 = arith.constant 0 : i32
    return %c0_i32, %c0_i32_0 : i32, i32
  }
  func.func @transform_2(%arg0: i32) -> (i32, i32) {
    %c0_i32 = arith.constant 0 : i32
    %c0_i32_0 = arith.constant 0 : i32
    %c0_i32_1 = arith.constant 0 : i32
    return %c0_i32, %c0_i32_0 : i32, i32
  }
  func.func @transform_3(%arg0: i32) -> (i32, i32) {
    %c0_i32 = arith.constant 0 : i32
    %c0_i32_0 = arith.constant 0 : i32
    %c0_i32_1 = arith.constant 0 : i32
    return %c0_i32, %c0_i32_0 : i32, i32
  }
  func.func @transform_4(%arg0: i32) -> (i32, i32) {
    %c0_i32 = arith.constant 0 : i32
    %c0_i32_0 = arith.constant 0 : i32
    %c0_i32_1 = arith.constant 0 : i32
    return %c0_i32, %c0_i32_0 : i32, i32
  }
  func.func @transform_5(%arg0: i32) -> (i32, i32) {
    %c0_i32 = arith.constant 0 : i32
    %c0_i32_0 = arith.constant 0 : i32
    %c0_i32_1 = arith.constant 0 : i32
    return %c0_i32, %c0_i32_0 : i32, i32
  }
  func.func @transform_6(%arg0: i32) -> (i32, i32) {
    %c0_i32 = arith.constant 0 : i32
    %c0_i32_0 = arith.constant 0 : i32
    %c0_i32_1 = arith.constant 0 : i32
    return %c0_i32, %c0_i32_0 : i32, i32
  }
  func.func @transform_7(%arg0: i32) -> (i32, i32) {
    %c0_i32 = arith.constant 0 : i32
    %c0_i32_0 = arith.constant 0 : i32
    %c0_i32_1 = arith.constant 0 : i32
    return %c0_i32, %c0_i32_0 : i32, i32
  }
  func.func @transform_8(%arg0: i32) -> (i32, i32) {
    %c0_i32 = arith.constant 0 : i32
    %c0_i32_0 = arith.constant 0 : i32
    %c0_i32_1 = arith.constant 0 : i32
    return %c0_i32, %c0_i32_0 : i32, i32
  }
  func.func @transform_9(%arg0: i32) -> (i32, i32) {
    %c0_i32 = arith.constant 0 : i32
    %c0_i32_0 = arith.constant 0 : i32
    %c0_i32_1 = arith.constant 0 : i32
    return %c0_i32, %c0_i32_0 : i32, i32
  }
  func.func @transform_10(%arg0: i32) -> (i32, i32) {
    %c0_i32 = arith.constant 0 : i32
    %c0_i32_0 = arith.constant 0 : i32
    %c0_i32_1 = arith.constant 0 : i32
    return %c0_i32, %c0_i32_0 : i32, i32
  }
  func.func @transform_11(%arg0: i32) -> (i32, i32) {
    %c0_i32 = arith.constant 0 : i32
    %c0_i32_0 = arith.constant 0 : i32
    return %c0_i32, %arg0 : i32, i32
  }
}

</mosaic_0001>

<bundles_post_ra>
// kernel: tpu_custom_call.1
= control target key start
LH: loop header
LB: loop body
LE: loop exit
PB: predicated region body
PF: predicated region fallthrough
CT: control target
= control target key end

     0   :  { %vm94_vm0 = vcmask 1043456   ;;  %vm81_vm1 = vcmask 31744   ;;  %v831_v5 = vmov 0   ;;  %s1020_s0 = inlined_call_operand.vmem [shape: f32[4,8], index: 0, kind: input, shape index: {}]   ;;  %s1021_s1 = inlined_call_operand.vmem [shape: f32[32,4], index: 1, kind: input, shape index: {}]   ;;  %s1022_s2 = inlined_call_operand.vmem [shape: f32[32,1], index: 2, kind: input, shape index: {}]   ;;  %s1023_s3 = inlined_call_operand.vmem [shape: f32[32,32], index: 3, kind: input, shape index: {}]   ;;  %s1024_s4 = inlined_call_operand.vmem [shape: f32[32,1], index: 4, kind: input, shape index: {}]   ;;  %s1025_s5 = inlined_call_operand.vmem [shape: f32[32,32], index: 5, kind: input, shape index: {}]   ;;  %s1026_s6 = inlined_call_operand.vmem [shape: f32[32,1], index: 6, kind: input, shape index: {}]   ;;  %s1027_s7 = inlined_call_operand.vmem [shape: f32[32,32], index: 7, kind: input, shape index: {}]   ;;  %s1028_s8 = inlined_call_operand.vmem [shape: f32[32,1], index: 8, kind: input, shape index: {}]   ;;  %s1029_s9 = inlined_call_operand.vmem [shape: f32[2,32], index: 9, kind: input, shape index: {}]   ;;  %s1030_s10 = inlined_call_operand.vmem [shape: f32[2,1], index: 10, kind: input, shape index: {}]   ;;  %s1031_s11 = inlined_call_operand.hbm [shape: f32[2,8], index: 11, kind: output, shape index: {}]  }
   0x1   :  { %v39_v0 = vld [vmem:[%s1020_s0] sm:$0xf]  ;;  %v58_v2 = vld [vmem:[%s1021_s1 + $0x8] sm:$0xff]  ;;  %v59_v3 = vld [vmem:[%s1021_s1 + $0x10] sm:$0xff]  ;;  %775 = vset.pattern.permute.xlu0 %v831_v5  ;;  %776 = vset.pattern.permute.xlu1 %v831_v5 }
   0x2   :  { %v57_v1 = vld [vmem:[%s1021_s1] sm:$0xff]  ;;  %710 = vmatprep.subr.msk.mxu0 %vm94_vm0, %v39_v0  ;;  %v43_v4 = vld [vmem:[%s1022_s2 + $0x18] sm:$0xff]  ;;  %v41_v6 = vld [vmem:[%s1022_s2 + $0x8] sm:$0xff] }
   0x3   :  { %712 = vmatprep.mubr.msk.f32.mxu0 %vm81_vm1, %v57_v1  ;;  %711 = vmatpush3.msk.msra.mxu0 %vm94_vm0, %v39_v0  ;;  %v60_v7 = vld [vmem:[%s1021_s1 + $0x18] sm:$0xff]  ;;  %v42_v8 = vld [vmem:[%s1022_s2 + $0x10] sm:$0xff]  ;;  %v40_v9 = vld [vmem:[%s1022_s2] sm:$0xff] }
   0x4   :  { %713 = vmatmul.mubr.msk.f32.vlgmr.msra.gmra.mxu0 %vm81_vm1, %v58_v2  ;;  %78 = vperm.xlu0 %775, %v43_v4  }
   0x5   :  { %715 = vmatprep.mubr.msk.f32.mxu0 %vm81_vm1, %v59_v3  ;;  %68 = vperm.xlu1 %776, %v41_v6  }
   0x8   :  { %716 = vmatmul.mubr.msk.f32.gmra.mxu0 %vm81_vm1, %v60_v7  ;;  %73 = vperm.xlu0 %775, %v42_v8  }
   0x9   :  { %16 = vsyncpa [#allocation3], 0  ;;  %v47_v10 = vld [vmem:[%s1024_s4 + $0x18] sm:$0xff]  ;;  %63 = vperm.xlu1 %776, %v40_v9   ;;  %v46_v11 = vld [vmem:[%s1024_s4 + $0x10] sm:$0xff]  ;;  %vm211_vm2 = vcmask 261120   ;;  %vm833_vm3 = vmmov 0  }
   0xa   :  { %v45_v12 = vld [vmem:[%s1024_s4 + $0x8] sm:$0xff]  ;;  %v44_v13 = vld [vmem:[%s1024_s4] sm:$0xff]  ;;  %v51_v14 = vld [vmem:[%s1026_s6 + $0x18] sm:$0xff]  ;;  %s834_s15 = smov [#allocation2]   ;;  %vm642_vm4 = vcmask 58368  }
   0xb   :  { %v50_v15 = vld [vmem:[%s1026_s6 + $0x10] sm:$0xff]  ;;  %v49_v16 = vld [vmem:[%s1026_s6 + $0x8] sm:$0xff]  ;;  %v48_v17 = vld [vmem:[%s1026_s6] sm:$0xff]  ;;  %s650_s6 = sshll.u32 %s834_s15, 4  ;;  %s651_s6 = int_to_ptr.vmem [resolvable:$true] %s650_s6 }
   0xc   :  { %208 = vperm.xlu0 %775, %v47_v10   ;;  %v55_v18 = vld [vmem:[%s1028_s8 + $0x18] sm:$0xff]  ;;  %v54_v19 = vld [vmem:[%s1028_s8 + $0x10] sm:$0xff]  ;;  %v53_v20 = vld [vmem:[%s1028_s8 + $0x8] sm:$0xff]  ;;  %s809_s16 = scalar_lea.vmem %s651_s6, 32  ;;  %p814_p1 = scmp.lt.s32.totalorder %s651_s6, %s651_s6 }
   0xd   :  { %203 = vperm.xlu1 %776, %v46_v11   ;;  %v52_v21 = vld [vmem:[%s1028_s8] sm:$0xff]  ;;  %v188_v40 = vld [vmem:[%s1023_s3 + $0x8] sm:$0xff]  ;;  %v189_v41 = vld [vmem:[%s1023_s3 + $0x10] sm:$0xff]  ;;  %p810_p0 = scmp.ne.s32.totalorder %s651_s6, %s809_s16  ;;  %p815_p2 = scmp.lt.s32.totalorder %s809_s16, %s809_s16 }
   0xe   :  { %v56_v22 = vld [vmem:[%s1030_s10] sm:$0x3]  ;;  %v190_v42 = vld [vmem:[%s1023_s3 + $0x18] sm:$0xff]  ;;  %v310_v60 = vld [vmem:[%s1025_s5 + $0x8] sm:$0xff] }
   0xf   :  { %v187_v23 = vld [vmem:[%s1023_s3] sm:$0xff]  ;;  %v311_v61 = vld [vmem:[%s1025_s5 + $0x10] sm:$0xff]  ;;  %v312_v62 = vld [vmem:[%s1025_s5 + $0x18] sm:$0xff]  ;;  %p816_p3 = por %p815_p2, %p814_p1 }
  0x10   :  { %198 = vperm.xlu0 %775, %v45_v12   ;;  %726 = vmatprep.mubr.msk.f32.mxu1 %vm211_vm2, %v187_v23  ;;  %v309_v43 = vld [vmem:[%s1025_s5] sm:$0xff] }
  0x11   :  { %193 = vperm.xlu1 %776, %v44_v13   ;;  %740 = vmatprep.mubr.msk.f32.mxu0 %vm211_vm2, %v309_v43  ;;  %v434_v63 = vld [vmem:[%s1027_s7] sm:$0xff]  ;;  %p817_p4 = pnand %p816_p3, %p810_p0 }
  0x14   :  { %334 = vperm.xlu0 %775, %v51_v14  }
  0x15   :  { %329 = vperm.xlu1 %776, %v50_v15  }
  0x18   :  { %324 = vperm.xlu0 %775, %v49_v16   ;;  %v435_v16 = vld [vmem:[%s1027_s7 + $0x8] sm:$0xff] }
  0x19   :  { %319 = vperm.xlu1 %776, %v48_v17   ;;  %v436_v17 = vld [vmem:[%s1027_s7 + $0x10] sm:$0xff] }
  0x1c   :  { %459 = vperm.xlu0 %775, %v55_v18   ;;  %v437_v18 = vld [vmem:[%s1027_s7 + $0x18] sm:$0xff] }
  0x1d   :  { %454 = vperm.xlu1 %776, %v54_v19   ;;  %v832_v19 = vmov 0.0  }
  0x20   :  { %449 = vperm.xlu0 %775, %v53_v20  }
  0x21   :  { %444 = vperm.xlu1 %776, %v52_v21  }
  0x24   :  { %566 = vperm.xlu0 %775, %v56_v22  }
  0x7f   :  { %v79_v24 = vpop.permute.xlu0 %78 }
  0x80   :  { %v69_v26 = vpop.permute.xlu1 %68 }
  0x83   :  { %v74_v30 = vpop.permute.xlu0 %73 }
  0x84   :  { %v64_v34 = vpop.permute.xlu1 %63 }
  0x87   :  { %v209_v44 = vpop.permute.xlu0 %208 }
  0x88   :  { %v204_v46 = vpop.permute.xlu1 %203 }
  0x8b   :  { %v199_v50 = vpop.permute.xlu0 %198 }
  0x8c   :  { %v194_v54 = vpop.permute.xlu1 %193 }
  0x8f   :  { %v335_v0 = vpop.permute.xlu0 %334 }
  0x90   :  { %v330_v2 = vpop.permute.xlu1 %329 }
  0x93   :  { %v325_v6 = vpop.permute.xlu0 %324 }
  0x94   :  { %v320_v10 = vpop.permute.xlu1 %319 }
  0x97   :  { %v460_v20 = vpop.permute.xlu0 %459 }
  0x98   :  { %v455_v22 = vpop.permute.xlu1 %454 }
  0xc4   :  { %v714_v25 = vpop.f32.mrf.mxu0 }
  0xc5   :  { %v170_v32 = vadd.f32 %v714_v25, %v69_v26  ;;  %v450_v26 = vpop.permute.xlu0 %449 }
  0xc6   :  { %v164_v27 = vpop.f32.mrf.mxu0 }
  0xc7   :  { %v165_v35 = vadd.f32 %v164_v27, %v64_v34 }
  0xc8   :  { %v717_v28 = vpop.f32.mrf.mxu0 }
  0xc9   :  { %v180_v29 = vadd.f32 %v717_v28, %v79_v24 }
  0xca   :  { %v174_v31 = vpop.f32.mrf.mxu0 }
  0xcb   :  { %777 = vtanh.f32 %v180_v29  ;;  %v175_v33 = vadd.f32 %v174_v31, %v74_v30  ;;  %v445_v30 = vpop.permute.xlu1 %444 }
  0xcd   :  { %779 = vtanh.f32 %v175_v33 }
  0xce   :  { %781 = vtanh.f32 %v170_v32 }
  0xcf   :  { %783 = vtanh.f32 %v165_v35  ;;  %v563_v35 = vld [vmem:[%s1029_s9] sm:$0x3] }
  0xd8   :  { %v778_v36 = vpop.eup %777 }
  0xd9   :  { %718 = vmatprep.subr.mxu1 %v778_v36 }
  0xda   :  { %v780_v37 = vpop.eup %779  ;;  %719 = vmatpush3.msra.mxu1 %v778_v36 }
  0xdb   :  { %720 = vmatprep.subr.mxu1 %v780_v37  ;;  %v782_v38 = vpop.eup %781 }
  0xdc   :  { %721 = vmatpush3.msra.mxu1 %v780_v37  ;;  %v784_v39 = vpop.eup %783  ;;  %v567_v37 = vpop.permute.xlu0 %566 }
  0xdd   :  { %722 = vmatprep.subr.mxu1 %v782_v38 }
  0xde   :  { %723 = vmatpush3.msra.mxu1 %v782_v38 }
  0xdf   :  { %724 = vmatprep.subr.mxu1 %v784_v39 }
  0xe0   :  { %725 = vmatpush3.msra.mxu1 %v784_v39 }
  0xe1   :  { %727 = vmatmul.mubr.msk.f32.vlgmr.msra.gmra.mxu1 %vm211_vm2, %v188_v40 }
  0xe2   :  { %729 = vmatprep.mubr.msk.f32.mxu1 %vm211_vm2, %v189_v41 }
  0xe5   :  { %730 = vmatmul.mubr.msk.f32.gmra.mxu1 %vm211_vm2, %v190_v42 }
  0xe6   :  { %754 = vmatprep.mubr.msk.f32.mxu1 %vm211_vm2, %v434_v63 }
 0x1a1   :  { %v728_v45 = vpop.f32.mrf.mxu1 }
 0x1a2   :  { %v296_v52 = vadd.f32 %v728_v45, %v199_v50 }
 0x1a3   :  { %v290_v47 = vpop.f32.mrf.mxu1 }
 0x1a4   :  { %v291_v55 = vadd.f32 %v290_v47, %v194_v54 }
 0x1a5   :  { %v731_v48 = vpop.f32.mrf.mxu1 }
 0x1a6   :  { %v306_v49 = vadd.f32 %v731_v48, %v209_v44 }
 0x1a7   :  { %v300_v51 = vpop.f32.mrf.mxu1 }
 0x1a8   :  { %785 = vtanh.f32 %v306_v49  ;;  %v301_v53 = vadd.f32 %v300_v51, %v204_v46 }
 0x1aa   :  { %787 = vtanh.f32 %v301_v53 }
 0x1ab   :  { %789 = vtanh.f32 %v296_v52 }
 0x1ac   :  { %791 = vtanh.f32 %v291_v55 }
 0x1b5   :  { %v786_v56 = vpop.eup %785 }
 0x1b6   :  { %732 = vmatprep.subr.mxu0 %v786_v56 }
 0x1b7   :  { %v788_v57 = vpop.eup %787  ;;  %733 = vmatpush3.msra.mxu0 %v786_v56 }
 0x1b8   :  { %734 = vmatprep.subr.mxu0 %v788_v57  ;;  %v790_v58 = vpop.eup %789 }
 0x1b9   :  { %735 = vmatpush3.msra.mxu0 %v788_v57  ;;  %v792_v59 = vpop.eup %791 }
 0x1ba   :  { %736 = vmatprep.subr.mxu0 %v790_v58 }
 0x1bb   :  { %737 = vmatpush3.msra.mxu0 %v790_v58 }
 0x1bc   :  { %738 = vmatprep.subr.mxu0 %v792_v59 }
 0x1bd   :  { %739 = vmatpush3.msra.mxu0 %v792_v59 }
 0x1be   :  { %741 = vmatmul.mubr.msk.f32.vlgmr.msra.gmra.mxu0 %vm211_vm2, %v310_v60  ;;  %760 = vmatprep.subr.mxu0 %v832_v19 }
 0x1bf   :  { %743 = vmatprep.mubr.msk.f32.mxu0 %vm211_vm2, %v311_v61 }
 0x1c2   :  { %744 = vmatmul.mubr.msk.f32.gmra.mxu0 %vm211_vm2, %v312_v62 }
 0x1c3   :  { %768 = vmatprep.mubr.msk.f32.mxu0 %vm833_vm3, %v832_v19 }
 0x27e   :  { %v742_v1 = vpop.f32.mrf.mxu0 }
 0x27f   :  { %v421_v8 = vadd.f32 %v742_v1, %v325_v6 }
 0x280   :  { %v415_v3 = vpop.f32.mrf.mxu0 }
 0x281   :  { %v416_v11 = vadd.f32 %v415_v3, %v320_v10 }
 0x282   :  { %v745_v4 = vpop.f32.mrf.mxu0 }
 0x283   :  { %v431_v5 = vadd.f32 %v745_v4, %v335_v0 }
 0x284   :  { %v425_v7 = vpop.f32.mrf.mxu0 }
 0x285   :  { %793 = vtanh.f32 %v431_v5  ;;  %v426_v9 = vadd.f32 %v425_v7, %v330_v2 }
 0x287   :  { %795 = vtanh.f32 %v426_v9 }
 0x288   :  { %797 = vtanh.f32 %v421_v8 }
 0x289   :  { %799 = vtanh.f32 %v416_v11 }
 0x292   :  { %v794_v12 = vpop.eup %793 }
 0x293   :  { %746 = vmatprep.subr.mxu1 %v794_v12 }
 0x294   :  { %v796_v13 = vpop.eup %795  ;;  %747 = vmatpush3.msra.mxu1 %v794_v12 }
 0x295   :  { %748 = vmatprep.subr.mxu1 %v796_v13  ;;  %v798_v14 = vpop.eup %797 }
 0x296   :  { %749 = vmatpush3.msra.mxu1 %v796_v13  ;;  %v800_v15 = vpop.eup %799 }
 0x297   :  { %750 = vmatprep.subr.mxu1 %v798_v14 }
 0x298   :  { %751 = vmatpush3.msra.mxu1 %v798_v14 }
 0x299   :  { %752 = vmatprep.subr.mxu1 %v800_v15 }
 0x29a   :  { %753 = vmatpush3.msra.mxu1 %v800_v15 }
 0x29b   :  { %755 = vmatmul.mubr.msk.f32.vlgmr.msra.gmra.mxu1 %vm211_vm2, %v435_v16 }
 0x29c   :  { %757 = vmatprep.mubr.msk.f32.mxu1 %vm211_vm2, %v436_v17 }
 0x29f   :  { %758 = vmatmul.mubr.msk.f32.gmra.mxu1 %vm211_vm2, %v437_v18 }
 0x35b   :  { %v756_v21 = vpop.f32.mrf.mxu1 }
 0x35c   :  { %v546_v28 = vadd.f32 %v756_v21, %v450_v26 }
 0x35d   :  { %v540_v23 = vpop.f32.mrf.mxu1 }
 0x35e   :  { %v541_v31 = vadd.f32 %v540_v23, %v445_v30 }
 0x35f   :  { %v759_v24 = vpop.f32.mrf.mxu1 }
 0x360   :  { %v556_v25 = vadd.f32 %v759_v24, %v460_v20 }
 0x361   :  { %v550_v27 = vpop.f32.mrf.mxu1 }
 0x362   :  { %801 = vtanh.f32 %v556_v25  ;;  %v551_v29 = vadd.f32 %v550_v27, %v455_v22 }
 0x364   :  { %803 = vtanh.f32 %v551_v29 }
 0x365   :  { %805 = vtanh.f32 %v546_v28 }
 0x366   :  { %807 = vtanh.f32 %v541_v31 }
 0x36f   :  { %v802_v32 = vpop.eup %801 }
 0x370   :  { %761 = vmatpush3.msra.mxu0 %v802_v32 }
 0x371   :  { %v804_v33 = vpop.eup %803  ;;  %762 = vmatprep.subr.mxu0 %v832_v19 }
 0x372   :  { %763 = vmatpush3.msra.mxu0 %v804_v33  ;;  %v806_v34 = vpop.eup %805 }
 0x373   :  { %764 = vmatprep.subr.mxu0 %v832_v19  ;;  %v808_v36 = vpop.eup %807 }
 0x374   :  { %765 = vmatpush3.msra.mxu0 %v806_v34 }
 0x375   :  { %766 = vmatprep.subr.mxu0 %v832_v19 }
 0x376   :  { %767 = vmatpush3.msra.mxu0 %v808_v36 }
 0x377   :  { %769 = vmatmul.mubr.msk.f32.vlgmr.msra.gmra.mxu0 %vm211_vm2, %v563_v35 }
 0x437   :  { %v638_v38 = vpop.f32.mrf.mxu0 }
 0x438   :  { %v639_v39 = vadd.f32 %v638_v38, %v567_v37 }
 0x439   :  { %v770_v40 = vpop.f32.mrf.mxu0 }
 0x43a   :  { %643 = vst.msk [vmem:[#allocation2] sm:$0x3] %vm642_vm4, %v639_v39 }
 0x43b   :  { %820 = shalt.err (!%p817_p4)
}
 0x43c   :  { %653 = dma.vmem_to_hbm [thread:$0]  %s651_s6, 32, %s1031_s11, [#allocation3]  }
 0x43d   :  { %829 = dma.done.wait [#allocation3], 32  }
 0x43e   :  { %830 = vsyncadd [#allocation3], 4294967264 }
 0x43f   :  { %657 = vsyncpa [#allocation3], 1 }

</bundles_post_ra>
